<compile_context>
chip_gen: v7x
topology: tpu7x:2x2x1
jax: 0.10.0
libtpu: 0.0.40
codegen_flags: <defaults>
</compile_context>

<pallas_src>
import functools
import math

import jax
import jax.numpy as jnp
from jax.experimental import pallas as pl
from jax.experimental.pallas import tpu as pltpu

_LANE = 128


def _build_pe_table(d_model: int, max_len: int = 50) -> jnp.ndarray:
    """Deterministic sinusoidal table, identical to the PyTorch __init__ buffer (fp32)."""
    assert d_model % 2 == 0, "PyTorch reference requires even d_model"
    position = jnp.arange(0, max_len, dtype=jnp.float32)[:, None]              # (max_len, 1)
    div_term = jnp.exp(
        jnp.arange(0, d_model, 2, dtype=jnp.float32) * (-math.log(10000.0) / d_model)
    )                                                                          # (d_model//2,)
    angles = position * div_term                                               # (max_len, d_model//2)
    pe = jnp.zeros((max_len, d_model), dtype=jnp.float32)
    pe = pe.at[:, 0::2].set(jnp.sin(angles))
    pe = pe.at[:, 1::2].set(jnp.cos(angles))
    return pe[None, :, :]                                                      # (1, max_len, d_model)


def _round_up(x: int, m: int) -> int:
    return (x + m - 1) // m * m


def _sublane_pack(itemsize: int) -> int:
    # f32 -> 8 sublanes per tile row group, bf16 -> 16, int8/fp8 -> 32.
    return max(8, 32 // itemsize)


def _default_block_budget() -> int:
    """Padded-byte budget for all pipeline buffers (x+out double-buffered + resident pe)."""
    try:
        vmem_cap = pltpu.get_tpu_info().vmem_capacity_bytes
    except Exception:
        vmem_cap = 64 << 20  # conservative (v7x-sized) fallback
    # <= 1/4 of physical VMEM per TensorCore, capped at 24 MiB:
    #   v5e/v6e (128 MiB) -> 24 MiB of buffers, v7x (64 MiB/TC) -> 16 MiB.
    # Large enough to sit at >=85% of the HBM roofline on all three generations,
    # small enough to leave headroom for compiler scratch.
    return min(24 << 20, vmem_cap // 4)


def _choose_fold(batch: int, seq: int, d_model: int, pack: int) -> int:
    """Pick k | seq so x can be viewed as (batch*k, (seq//k)*d_model).

    Folding sequence chunks into the row (sublane) axis fills the dtype's
    sublane pack when batch is small, without shrinking the lane-dense column
    axis below one vreg row or breaking its 128-lane alignment.
    """
    best_k, best_key = 1, None
    for k in range(1, seq + 1):
        if seq % k:
            continue
        rows = batch * k
        cols = (seq // k) * d_model
        if k > 1 and rows > 4 * pack:
            break                                   # more rows than a few packs buys nothing
        if k > 1 and (cols < _LANE or cols % _LANE != 0):
            continue                                # folds must keep the column axis lane-aligned
        key = (
            rows % pack == 0,                       # fully packed sublanes
            min(rows, pack),                        # otherwise: how full the pack is
            cols % _LANE == 0,                      # lane-aligned tiling possible
            -k,                                     # prefer the smallest fold that achieves it
        )
        if best_key is None or key > best_key:
            best_key, best_k = key, k
    return best_k


def _choose_col_tile(rows: int, cols: int, itemsize: int, pe_rows: int,
                     budget_bytes: int) -> tuple[int, int, int]:
    """Pick the column tile width for the (rows, cols) x/out views.

    Accounts for sublane padding (rows rounded up to the dtype's pack for the
    x/out blocks, pe rows rounded up to 8) so the double-buffered footprint
    genuinely fits the budget. Returns (tile, num_tiles, padded_cols) where
    padded_cols = num_tiles * tile is the column extent the resident pe buffer
    must cover.
    """
    pack = _sublane_pack(itemsize)
    padded_rows = _round_up(rows, pack)
    # Resident pe block (fp32, counted at 2 buffers to stay conservative).
    pe_fixed = 2 * _round_up(pe_rows, 8) * _round_up(cols, _LANE) * 4
    # x + out, double-buffered: 4 padded blocks total.
    per_col = 4 * padded_rows * itemsize
    avail = max(budget_bytes - pe_fixed, per_col * _LANE)
    max_tile = max(_LANE, avail // per_col)

    if cols <= max_tile:
        return cols, 1, cols                        # single full-extent block (always legal)

    max_tile = (max_tile // _LANE) * _LANE          # lane-aligned tiles from here on

    if cols % _LANE == 0:
        # Prefer a tile that divides cols exactly (every store is an unmasked
        # full-lane vst, no near-empty tail step); among those, prefer an even
        # tile count so v7x's two TensorCores stay balanced.
        m = cols // _LANE
        divisors = [q for q in range(1, m + 1) if m % q == 0 and q * _LANE <= max_tile]
        if divisors:
            best = max(divisors)
            even = [q for q in divisors if (m // q) % 2 == 0]
            if even and max(even) * 2 >= best:
                best = max(even)
            return best * _LANE, m // best, cols

    # Fallback: largest lane-aligned tile within budget; the tail x/out block is
    # partial (masked stores) and pe is zero-padded up to num_tiles*tile columns
    # so the in-kernel slice never reads out of bounds.
    tile = max(_LANE, max_tile)
    num_tiles = -(-cols // tile)
    return tile, num_tiles, num_tiles * tile


def _add_pe_kernel(x_ref, pe_ref, o_ref, *, batch: int):
    tile = x_ref.shape[1]
    if pe_ref.shape[1] == tile:
        pe_blk = pe_ref[...]                                        # single tile: whole resident pe
    else:
        start = pl.multiple_of(pl.program_id(0) * tile, _LANE)      # tile is a multiple of 128 here
        pe_blk = pe_ref[:, pl.ds(start, tile)]                      # (k, tile) slice of resident pe
    if batch > 1:
        pe_blk = jnp.tile(pe_blk, (batch, 1))                       # broadcast over the batch rows
    # Add in fp32 (matches PyTorch's fp32 pe buffer / promotion), cast on store.
    o_ref[...] = (x_ref[...].astype(jnp.float32) + pe_blk).astype(o_ref.dtype)


def positional_encoding_forward(x: jnp.ndarray, pe: jnp.ndarray, *,
                                block_budget_bytes: int | None = None,
                                donate_x: bool = False) -> jnp.ndarray:
    """x: (B, S, D); pe: (1, max_len, D) float32 buffer. Returns x + pe[:, :S]."""
    B, S, D = x.shape
    assert pe.ndim == 3 and pe.shape[0] == 1 and pe.shape[2] == D and pe.shape[1] >= S
    dtype = x.dtype
    itemsize = jnp.dtype(dtype).itemsize
    pack = _sublane_pack(itemsize)
    if block_budget_bytes is None:
        block_budget_bytes = _default_block_budget()

    # Fold a factor k of S into the row axis so sublanes are well filled.
    k = _choose_fold(B, S, D, pack)
    rows = B * k
    cols = (S // k) * D

    # Zero-copy row-major views: (B, S, D) -> (B*k, (S//k)*D).
    x2 = x.reshape(rows, cols)
    # pe stays fp32 (no per-call cast pass over the buffer); only the first S
    # positions are used, reshaped to (k, cols) so row r of pe2 matches rows
    # {r, r+k, r+2k, ...} of x2 (batch-major, chunk-minor ordering).
    pe2 = pe[0, :S, :].astype(jnp.float32).reshape(k, cols)

    tile, num_tiles, padded_cols = _choose_col_tile(rows, cols, itemsize, k, block_budget_bytes)
    if padded_cols > cols:
        # Keep the in-kernel pe slice in-bounds for the partial tail tile.
        pe2 = jnp.pad(pe2, ((0, 0), (0, padded_cols - cols)))

    kernel = functools.partial(_add_pe_kernel, batch=B)
    vmem_limit = min(block_budget_bytes + (8 << 20), 48 << 20)

    out2 = pl.pallas_call(
        kernel,
        out_shape=jax.ShapeDtypeStruct((rows, cols), dtype),
        grid_spec=pltpu.PrefetchScalarGridSpec(
            num_scalar_prefetch=0,
            grid=(num_tiles,),
            in_specs=[
                pl.BlockSpec((rows, tile), lambda t: (0, t)),          # streamed x column tile
                pl.BlockSpec((k, padded_cols), lambda t: (0, 0)),      # VMEM-resident pe (fetched once)
            ],
            out_specs=pl.BlockSpec((rows, tile), lambda t: (0, t)),
        ),
        compiler_params=pltpu.CompilerParams(
            dimension_semantics=("parallel",),       # column-tile axis shards across v7x TCs
            vmem_limit_bytes=vmem_limit,
        ),
        input_output_aliases=({0: 0} if donate_x else {}),
    )(x2, pe2)

    return out2.reshape(B, S, D)


if __name__ == "__main__":
    B, S, D = 2, 8, 32
    MAX_LEN = 50

    key = jax.random.PRNGKey(0)
    x = jax.random.normal(key, (B, S, D), dtype=jnp.float32)
    pe = _build_pe_table(D, MAX_LEN)

    out = jax.block_until_ready(positional_encoding_forward(x, pe))
    ref = x + pe[:, :S, :]
    assert out.shape == (B, S, D) and out.dtype == x.dtype
    assert jnp.allclose(out, ref, atol=1e-6, rtol=1e-6), "mismatch vs reference (f32)"

    # Exercise the multi-tile path (resident-pe in-kernel slice, even tile count)
    # by forcing a tiny block budget.
    x_mt = jax.random.normal(jax.random.PRNGKey(1), (2, 32, 64), dtype=jnp.float32)
    pe_mt = _build_pe_table(64, MAX_LEN)
    out_mt = jax.block_until_ready(
        positional_encoding_forward(x_mt, pe_mt, block_budget_bytes=64 * 1024))
    assert jnp.allclose(out_mt, x_mt + pe_mt[:, :32, :], atol=1e-6, rtol=1e-6), "mismatch (multi-tile)"

    # Exercise the masked-tail path (cols not a multiple of 128, padded pe).
    x_tl = jax.random.normal(jax.random.PRNGKey(2), (3, 5, 96), dtype=jnp.float32)
    pe_tl = _build_pe_table(96, MAX_LEN)
    out_tl = jax.block_until_ready(
        positional_encoding_forward(x_tl, pe_tl, block_budget_bytes=16 * 1024))
    assert jnp.allclose(out_tl, x_tl + pe_tl[:, :5, :], atol=1e-6, rtol=1e-6), "mismatch (tail tile)"

    # bf16 input: add is performed in fp32 in-kernel and cast on store.
    xb = x.astype(jnp.bfloat16)
    outb = jax.block_until_ready(positional_encoding_forward(xb, pe))
    refb = (xb.astype(jnp.float32) + pe[:, :S, :]).astype(jnp.bfloat16)
    assert jnp.allclose(outb.astype(jnp.float32), refb.astype(jnp.float32), atol=1e-2), "mismatch (bf16)"

    print("KERNEL_OK")
</pallas_src>

<mosaic_0001>
module attributes {stable_mosaic.version = 11 : i64} {
  func.func @_add_pe_kernel(%arg0: i32, %arg1: memref<4x128xf32, #tpu.memory_space<vmem>>, %arg2: memref<2x128xf32, #tpu.memory_space<vmem>>, %arg3: memref<4x128xf32, #tpu.memory_space<vmem>>) attributes {dimension_semantics = [#tpu.dimension_semantics<parallel>], iteration_bounds = array<i64: 1>, scalar_prefetch = 0 : i64, scratch_operands = 0 : i64, tpu.core_type = #tpu.core_type<tc>, window_params = [{transform_indices = @transform_0, window_bounds = array<i64: 4, 128>}, {pipeline_mode = #tpu.pipeline_mode<synchronous>, transform_indices = @transform_1, window_bounds = array<i64: 2, 128>}, {transform_indices = @transform_2, window_bounds = array<i64: 4, 128>}]} {
    %c0 = arith.constant 0 : index
    %c0_0 = arith.constant 0 : index
    %0 = vector.load %arg2[%c0, %c0_0] : memref<2x128xf32, #tpu.memory_space<vmem>>, vector<2x128xf32>
    %1 = tpu.concatenate %0, %0 in 0 : vector<2x128xf32>, vector<2x128xf32> -> vector<4x128xf32>
    %c0_1 = arith.constant 0 : index
    %c0_2 = arith.constant 0 : index
    %2 = vector.load %arg1[%c0_1, %c0_2] : memref<4x128xf32, #tpu.memory_space<vmem>>, vector<4x128xf32>
    %3 = arith.addf %2, %1 : vector<4x128xf32>
    %c0_3 = arith.constant 0 : index
    %c0_4 = arith.constant 0 : index
    %4 = vector.load %arg3[%c0_3, %c0_4] : memref<4x128xf32, #tpu.memory_space<vmem>>, vector<4x128xf32>
    tpu.vector_store %arg3[%c0_3, %c0_4], %3 {strides = array<i32>} : memref<4x128xf32, #tpu.memory_space<vmem>>, vector<4x128xf32>,
    return
  }
  func.func @transform_0(%arg0: i32) -> (i32, i32) {
    %c0_i32 = arith.constant 0 : i32
    %c0_i32_0 = arith.constant 0 : i32
    return %c0_i32, %arg0 : i32, i32
  }
  func.func @transform_1(%arg0: i32) -> (i32, i32) {
    %c0_i32 = arith.constant 0 : i32
    %c0_i32_0 = arith.constant 0 : i32
    %c0_i32_1 = arith.constant 0 : i32
    return %c0_i32, %c0_i32_0 : i32, i32
  }
  func.func @transform_2(%arg0: i32) -> (i32, i32) {
    %c0_i32 = arith.constant 0 : i32
    %c0_i32_0 = arith.constant 0 : i32
    return %c0_i32, %arg0 : i32, i32
  }
}

</mosaic_0001>

<bundles_post_ra>
// kernel: tpu_custom_call.1
= control target key start
LH: loop header
LB: loop body
LE: loop exit
PB: predicated region body
PF: predicated region fallthrough
CT: control target
= control target key end

     0   :  { %7 = vsyncpa [#allocation3], 0  ;;  %s142_s0 = inlined_call_operand.hbm [shape: f32[4,128], index: 0, kind: input, shape index: {}]   ;;  %s143_s1 = inlined_call_operand.vmem [shape: f32[2,128], index: 1, kind: input, shape index: {}]   ;;  %s144_s2 = inlined_call_operand.hbm [shape: f32[4,128], index: 2, kind: output, shape index: {}]  }
   0x1   :  { %8 = vsyncpa [#allocation4], 0  ;;  %s98_s9 = smov [#allocation2]   ;;  %s50_s13 = scalar_lea.hbm %s142_s0, 64 }
   0x2   :  { %s15_s10 = sshll.u32 %s98_s9, 4  ;;  %p51_p0 = scmp.ne.s32.totalorder %s142_s0, %s50_s13  ;;  %s16_s10 = int_to_ptr.vmem [resolvable:$true] %s15_s10 }
   0x3   :  { %p54_p1 = scmp.lt.u32.totalorder %s50_s13, %s142_s0 }
   0x5   :  { %p56_p2 = pnand %p54_p1, %p51_p0 }
   0x7   :  { %59 = shalt.err (!%p56_p2)
}
   0x8   :  { %s60_s18 = scalar_lea.vmem %s16_s10, 64  ;;  %p65_p4 = scmp.lt.s32.totalorder %s16_s10, %s16_s10 }
   0x9   :  { %p61_p3 = scmp.ne.s32.totalorder %s16_s10, %s60_s18  ;;  %p66_p5 = scmp.lt.s32.totalorder %s60_s18, %s60_s18 }
   0xb   :  { %p67_p6 = por %p66_p5, %p65_p4 }
   0xd   :  { %p68_p7 = pnand %p67_p6, %p61_p3 }
   0xf   :  { %71 = shalt.err (!%p68_p7)
}
  0x10   :  { %18 = dma.hbm_to_vmem [thread:$0]  %s142_s0, 64, %s16_s10, [#allocation3]  }
  0x11   :  { %94 = dma.done.wait [#allocation3], 64  }
  0x12   :  { %95 = vsyncadd [#allocation3], 4294967232  ;;  %v24_v0 = vld [vmem:[%s143_s1] sm:$0x3]  ;;  %vm28_vm0 = vcmask 1041408   ;;  %s99_s23 = smov [#allocation5]  }
  0x13   :  { %v26_v1 = vrot.slane %v24_v0, 6  ;;  %v30_v2 = vld [vmem:[#allocation2] sm:$0xf]  ;;  %s39_s24 = sshll.u32 %s99_s23, 4  ;;  %s40_s24 = int_to_ptr.vmem [resolvable:$true] %s39_s24 }
  0x14   :  { %s72_s25 = scalar_lea.vmem %s40_s24, 64  ;;  %p77_p9 = scmp.lt.s32.totalorder %s40_s24, %s40_s24 }
  0x15   :  { %v29_v3 = vsel %vm28_vm0, %v24_v0, %v26_v1  ;;  %p73_p8 = scmp.ne.s32.totalorder %s40_s24, %s72_s25  ;;  %p78_p10 = scmp.lt.s32.totalorder %s72_s25, %s72_s25 }
  0x16   :  { %v31_v4 = vadd.f32 %v30_v2, %v29_v3 }
  0x17   :  { %p79_p11 = por %p78_p10, %p77_p9 }
  0x18   :  { %32 = vst [vmem:[#allocation5] sm:$0xf] %v31_v4 }
  0x19   :  { %p80_p12 = pnand %p79_p11, %p73_p8 }
  0x1b   :  { %83 = shalt.err (!%p80_p12)
}
  0x1c   :  { %s84_s1 = scalar_lea.hbm %s144_s2, 64 }
  0x1d   :  { %p85_p13 = scmp.ne.s32.totalorder %s144_s2, %s84_s1  ;;  %p88_p0 = scmp.lt.u32.totalorder %s84_s1, %s144_s2 }
  0x1f   :  { %p90_p1 = pnand %p88_p0, %p85_p13 }
  0x21   :  { %93 = shalt.err (!%p90_p1)
}
  0x22   :  { %42 = dma.vmem_to_hbm [thread:$0]  %s40_s24, 64, %s144_s2, [#allocation4]  }
  0x23   :  { %96 = dma.done.wait [#allocation4], 64  }
  0x24   :  { %97 = vsyncadd [#allocation4], 4294967232 }
  0x25   :  { %46 = vsyncpa [#allocation3], 1 }
  0x26   :  { %47 = vsyncpa [#allocation4], 1 }

</bundles_post_ra>
